<compile_context>
chip_gen: v6e
topology: v6e:2x2x1
jax: 0.10.0
libtpu: 0.0.40
codegen_flags: <defaults>
</compile_context>

<pallas_src>
import jax
import jax.numpy as jnp
from jax.experimental import pallas as pl
from jax.experimental.pallas import tpu as pltpu

HIDDEN = 256


def _round_up(n, m):
    return ((n + m - 1) // m) * m


def soft_q_kernel(x_ref, a_ref, w1x_ref, w1a_ref, b1_ref, w2_ref, b2_ref,
                  w3_ref, b3_ref, out_ref):
    # In-kernel bf16 cast of the streamed activation tiles (VPU, hidden under
    # the MXU work); fc1 is the split matmul over obs- and act-features.
    xb = x_ref[...].astype(jnp.bfloat16)
    ab = a_ref[...].astype(jnp.bfloat16)
    h1 = (jnp.dot(xb, w1x_ref[...], preferred_element_type=jnp.float32)
          + jnp.dot(ab, w1a_ref[...], preferred_element_type=jnp.float32)
          + b1_ref[...])
    h1 = jnp.maximum(h1, 0.0)

    # fc2: bf16 x bf16 -> f32 accumulation.
    h2 = jnp.dot(h1.astype(jnp.bfloat16), w2_ref[...],
                 preferred_element_type=jnp.float32) + b2_ref[...]
    h2 = jnp.maximum(h2, 0.0)

    # fc3 (N=1): VPU multiply + lane reduction; scalar bias from SMEM.
    q = jnp.sum(h2 * w3_ref[...], axis=-1, keepdims=True) + b3_ref[0, 0]
    out_ref[...] = q.astype(out_ref.dtype)


def _pick_b_tile(B, b_tile_max):
    """Batch tile: multiple of 16 rows (bf16 sublane packing).

    Small batches -> a single grid step. Large batches -> at most ceil(B/2)
    rows per tile so the parallel batch axis has >= 2 steps (both TensorCores
    get work on megacore parts), capped by b_tile_max for VMEM headroom.
    """
    b16 = _round_up(B, 16)
    if b16 <= 512:
        return b16
    half = _round_up((B + 1) // 2, 16)
    return max(256, min(b_tile_max, half))


def soft_q_forward(x, a, params, *, b_tile=2048):
    """x: (B, obs_dim) f32, a: (B, act_dim) f32 -> (B, 1) f32."""
    w1x, w1a, b1, w2, b2, w3_row, b3 = params
    B, obs_dim = x.shape
    act_dim = a.shape[1]
    in_dim = obs_dim + act_dim
    assert w1x.shape == (obs_dim, HIDDEN) and w1a.shape == (act_dim, HIDDEN)

    bt = _pick_b_tile(B, b_tile)
    grid = (pl.cdiv(B, bt),)

    flops = 2 * B * (in_dim * HIDDEN + HIDDEN * HIDDEN + HIDDEN)
    bytes_accessed = (x.size * x.dtype.itemsize + a.size * a.dtype.itemsize
                      + sum(int(p.size) * p.dtype.itemsize for p in params)
                      + B * 4)

    vmem_limit = (32 << 20) if bt >= 1024 else None

    out = pl.pallas_call(
        soft_q_kernel,
        out_shape=jax.ShapeDtypeStruct((B, 1), jnp.float32),
        grid=grid,
        in_specs=[
            pl.BlockSpec((bt, obs_dim), lambda i: (i, 0)),      # x tile (streams)
            pl.BlockSpec((bt, act_dim), lambda i: (i, 0)),      # a tile (streams)
            pl.BlockSpec((obs_dim, HIDDEN), lambda i: (0, 0)),  # W1[obs] (resident, bf16)
            pl.BlockSpec((act_dim, HIDDEN), lambda i: (0, 0)),  # W1[act] (resident, bf16)
            pl.BlockSpec((1, HIDDEN), lambda i: (0, 0)),        # b1 (f32)
            pl.BlockSpec((HIDDEN, HIDDEN), lambda i: (0, 0)),   # W2 (resident, bf16)
            pl.BlockSpec((1, HIDDEN), lambda i: (0, 0)),        # b2 (f32)
            pl.BlockSpec((1, HIDDEN), lambda i: (0, 0)),        # W3 row (f32)
            pl.BlockSpec(memory_space=pltpu.SMEM),              # b3 scalar in SMEM
        ],
        out_specs=pl.BlockSpec((bt, 1), lambda i: (i, 0)),
        compiler_params=pltpu.CompilerParams(
            dimension_semantics=("parallel",),
            vmem_limit_bytes=vmem_limit),
        cost_estimate=pl.CostEstimate(
            flops=flops, transcendentals=0, bytes_accessed=bytes_accessed),
    )(x, a, w1x, w1a, b1, w2, b2, w3_row, b3)

    return out


def init_params(key, obs_dim, act_dim, hidden=HIDDEN):
    """Deterministic init matching nn.Linear default: U(-1/sqrt(fan_in), +1/sqrt(fan_in))."""
    in_dim = obs_dim + act_dim
    ks = jax.random.split(key, 6)

    def lin(kw, kb, fan_in, fan_out):
        bound = 1.0 / jnp.sqrt(jnp.float32(fan_in))
        w = jax.random.uniform(kw, (fan_in, fan_out), jnp.float32, -bound, bound)
        b = jax.random.uniform(kb, (1, fan_out), jnp.float32, -bound, bound)
        return w, b

    w1, b1 = lin(ks[0], ks[1], in_dim, hidden)
    w2, b2 = lin(ks[2], ks[3], hidden, hidden)
    w3, b3 = lin(ks[4], ks[5], hidden, 1)

    # fc1 weight split along the input dim so the kernel can consume x and a
    # as separate inputs (no wrapper-side concat). bf16 weights for the two
    # MXU matmuls (f32 accumulation in-kernel); fc3 weight kept f32 as a
    # (1, hidden) row for the VPU reduction.
    w1x = w1[:obs_dim].astype(jnp.bfloat16)
    w1a = w1[obs_dim:].astype(jnp.bfloat16)
    return (w1x, w1a, b1,
            w2.astype(jnp.bfloat16), b2,
            w3.T, b3)  # w3.T: (1, hidden), b3: (1, 1)


if __name__ == "__main__":
    key = jax.random.PRNGKey(0)
    k_obs, k_act, k_par = jax.random.split(key, 3)

    batch, obs_dim, act_dim = 8, 16, 4
    x = jax.random.normal(k_obs, (batch, obs_dim), jnp.float32)
    a = jax.random.normal(k_act, (batch, act_dim), jnp.float32)
    params = init_params(k_par, obs_dim, act_dim, hidden=HIDDEN)

    q = soft_q_forward(x, a, params)
    q = jax.block_until_ready(q)

    # Reference in plain JAX with the same bf16 quantization / f32 accumulation.
    w1x, w1a, b1, w2, b2, w3_row, b3 = params
    xb = x.astype(jnp.bfloat16)
    ab = a.astype(jnp.bfloat16)
    h1 = jnp.maximum(
        jnp.dot(xb, w1x, preferred_element_type=jnp.float32)
        + jnp.dot(ab, w1a, preferred_element_type=jnp.float32) + b1, 0.0)
    h2 = jnp.maximum(
        jnp.dot(h1.astype(jnp.bfloat16), w2,
                preferred_element_type=jnp.float32) + b2, 0.0)
    q_ref = jnp.sum(h2 * w3_row, axis=-1, keepdims=True) + b3

    assert q.shape == (batch, 1)
    assert jnp.allclose(q, q_ref, atol=1e-3, rtol=1e-3)

    print("KERNEL_OK")
</pallas_src>

<mosaic_0001>
module attributes {stable_mosaic.version = 11 : i64} {
  func.func @soft_q_kernel(%arg0: i32, %arg1: memref<16x16xf32, #tpu.memory_space<vmem>>, %arg2: memref<16x4xf32, #tpu.memory_space<vmem>>, %arg3: memref<16x256xbf16, #tpu.memory_space<vmem>>, %arg4: memref<4x256xbf16, #tpu.memory_space<vmem>>, %arg5: memref<1x256xf32, #tpu.memory_space<vmem>>, %arg6: memref<256x256xbf16, #tpu.memory_space<vmem>>, %arg7: memref<1x256xf32, #tpu.memory_space<vmem>>, %arg8: memref<1x256xf32, #tpu.memory_space<vmem>>, %arg9: memref<1x1xf32, #tpu.memory_space<smem>>, %arg10: memref<16x1xf32, #tpu.memory_space<vmem>>) attributes {dimension_semantics = [#tpu.dimension_semantics<parallel>], iteration_bounds = array<i64: 1>, scalar_prefetch = 0 : i64, scratch_operands = 0 : i64, tpu.core_type = #tpu.core_type<tc>, window_params = [{transform_indices = @transform_0, window_bounds = array<i64: 16, 16>}, {transform_indices = @transform_1, window_bounds = array<i64: 16, 4>}, {pipeline_mode = #tpu.pipeline_mode<synchronous>, transform_indices = @transform_2, window_bounds = array<i64: 16, 256>}, {pipeline_mode = #tpu.pipeline_mode<synchronous>, transform_indices = @transform_3, window_bounds = array<i64: 4, 256>}, {pipeline_mode = #tpu.pipeline_mode<synchronous>, transform_indices = @transform_4, window_bounds = array<i64: 1, 256>}, {pipeline_mode = #tpu.pipeline_mode<synchronous>, transform_indices = @transform_5, window_bounds = array<i64: 256, 256>}, {pipeline_mode = #tpu.pipeline_mode<synchronous>, transform_indices = @transform_6, window_bounds = array<i64: 1, 256>}, {pipeline_mode = #tpu.pipeline_mode<synchronous>, transform_indices = @transform_7, window_bounds = array<i64: 1, 256>}, {transform_indices = @transform_8, window_bounds = array<i64: 1, 1>}, {transform_indices = @transform_9, window_bounds = array<i64: 16, 1>}]} {
    %c0 = arith.constant 0 : index
    %c0_0 = arith.constant 0 : index
    %0 = vector.load %arg1[%c0, %c0_0] : memref<16x16xf32, #tpu.memory_space<vmem>>, vector<16x16xf32>
    %1 = arith.truncf %0 : vector<16x16xf32> to vector<16x16xbf16>
    %c0_1 = arith.constant 0 : index
    %c0_2 = arith.constant 0 : index
    %2 = vector.load %arg2[%c0_1, %c0_2] : memref<16x4xf32, #tpu.memory_space<vmem>>, vector<16x4xf32>
    %3 = arith.truncf %2 : vector<16x4xf32> to vector<16x4xbf16>
    %c0_3 = arith.constant 0 : index
    %c0_4 = arith.constant 0 : index
    %4 = vector.load %arg3[%c0_3, %c0_4] : memref<16x256xbf16, #tpu.memory_space<vmem>>, vector<16x256xbf16>
    %cst = arith.constant dense<0.000000e+00> : vector<16x256xf32>
    %5 = tpu.matmul %1, %4, %cst {dimension_numbers = #tpu.dot_dimension_numbers<[1], [0], [0], [1], [0, 0, 1, 1], [], []>} : vector<16x16xbf16>, vector<16x256xbf16>, vector<16x256xf32> -> vector<16x256xf32>
    %c0_5 = arith.constant 0 : index
    %c0_6 = arith.constant 0 : index
    %6 = vector.load %arg4[%c0_5, %c0_6] : memref<4x256xbf16, #tpu.memory_space<vmem>>, vector<4x256xbf16>
    %cst_7 = arith.constant dense<0.000000e+00> : vector<16x256xf32>
    %7 = tpu.matmul %3, %6, %cst_7 {dimension_numbers = #tpu.dot_dimension_numbers<[1], [0], [0], [1], [0, 0, 1, 1], [], []>} : vector<16x4xbf16>, vector<4x256xbf16>, vector<16x256xf32> -> vector<16x256xf32>
    %8 = arith.addf %5, %7 : vector<16x256xf32>
    %c0_8 = arith.constant 0 : index
    %c0_9 = arith.constant 0 : index
    %9 = vector.load %arg5[%c0_8, %c0_9] : memref<1x256xf32, #tpu.memory_space<vmem>>, vector<1x256xf32>
    %10 = vector.broadcast %9 : vector<1x256xf32> to vector<16x256xf32>
    %11 = arith.addf %8, %10 : vector<16x256xf32>
    %cst_10 = arith.constant 0.000000e+00 : f32
    %12 = vector.broadcast %cst_10 : f32 to vector<16x256xf32>
    %13 = arith.maximumf %11, %12 : vector<16x256xf32>
    %14 = arith.truncf %13 : vector<16x256xf32> to vector<16x256xbf16>
    %c0_11 = arith.constant 0 : index
    %c0_12 = arith.constant 0 : index
    %15 = vector.load %arg6[%c0_11, %c0_12] : memref<256x256xbf16, #tpu.memory_space<vmem>>, vector<256x256xbf16>
    %cst_13 = arith.constant dense<0.000000e+00> : vector<16x256xf32>
    %16 = tpu.matmul %14, %15, %cst_13 {dimension_numbers = #tpu.dot_dimension_numbers<[1], [0], [0], [1], [0, 0, 1, 1], [], []>} : vector<16x256xbf16>, vector<256x256xbf16>, vector<16x256xf32> -> vector<16x256xf32>
    %c0_14 = arith.constant 0 : index
    %c0_15 = arith.constant 0 : index
    %17 = vector.load %arg7[%c0_14, %c0_15] : memref<1x256xf32, #tpu.memory_space<vmem>>, vector<1x256xf32>
    %18 = vector.broadcast %17 : vector<1x256xf32> to vector<16x256xf32>
    %19 = arith.addf %16, %18 : vector<16x256xf32>
    %cst_16 = arith.constant 0.000000e+00 : f32
    %20 = vector.broadcast %cst_16 : f32 to vector<16x256xf32>
    %21 = arith.maximumf %19, %20 : vector<16x256xf32>
    %c0_17 = arith.constant 0 : index
    %c0_18 = arith.constant 0 : index
    %22 = vector.load %arg8[%c0_17, %c0_18] : memref<1x256xf32, #tpu.memory_space<vmem>>, vector<1x256xf32>
    %23 = vector.broadcast %22 : vector<1x256xf32> to vector<16x256xf32>
    %24 = arith.mulf %21, %23 : vector<16x256xf32>
    %cst_19 = arith.constant dense<0.000000e+00> : vector<16xf32>
    %25 = vector.multi_reduction <add>, %24, %cst_19 [1] : vector<16x256xf32> to vector<16xf32>
    %26 = vector.shape_cast %25 : vector<16xf32> to vector<16x1xf32>
    %c0_20 = arith.constant 0 : index
    %c0_21 = arith.constant 0 : index
    %27 = memref.load %arg9[%c0_20, %c0_21] : memref<1x1xf32, #tpu.memory_space<smem>>
    %28 = vector.broadcast %27 : f32 to vector<16x1xf32>
    %29 = arith.addf %26, %28 : vector<16x1xf32>
    %c0_22 = arith.constant 0 : index
    %c0_23 = arith.constant 0 : index
    %30 = vector.load %arg10[%c0_22, %c0_23] : memref<16x1xf32, #tpu.memory_space<vmem>>, vector<16x1xf32>
    tpu.vector_store %arg10[%c0_22, %c0_23], %29 {strides = array<i32>} : memref<16x1xf32, #tpu.memory_space<vmem>>, vector<16x1xf32>,
    return
  }
  func.func @transform_0(%arg0: i32) -> (i32, i32) {
    %c0_i32 = arith.constant 0 : i32
    %c0_i32_0 = arith.constant 0 : i32
    return %arg0, %c0_i32 : i32, i32
  }
  func.func @transform_1(%arg0: i32) -> (i32, i32) {
    %c0_i32 = arith.constant 0 : i32
    %c0_i32_0 = arith.constant 0 : i32
    return %arg0, %c0_i32 : i32, i32
  }
  func.func @transform_2(%arg0: i32) -> (i32, i32) {
    %c0_i32 = arith.constant 0 : i32
    %c0_i32_0 = arith.constant 0 : i32
    %c0_i32_1 = arith.constant 0 : i32
    return %c0_i32, %c0_i32_0 : i32, i32
  }
  func.func @transform_3(%arg0: i32) -> (i32, i32) {
    %c0_i32 = arith.constant 0 : i32
    %c0_i32_0 = arith.constant 0 : i32
    %c0_i32_1 = arith.constant 0 : i32
    return %c0_i32, %c0_i32_0 : i32, i32
  }
  func.func @transform_4(%arg0: i32) -> (i32, i32) {
    %c0_i32 = arith.constant 0 : i32
    %c0_i32_0 = arith.constant 0 : i32
    %c0_i32_1 = arith.constant 0 : i32
    return %c0_i32, %c0_i32_0 : i32, i32
  }
  func.func @transform_5(%arg0: i32) -> (i32, i32) {
    %c0_i32 = arith.constant 0 : i32
    %c0_i32_0 = arith.constant 0 : i32
    %c0_i32_1 = arith.constant 0 : i32
    return %c0_i32, %c0_i32_0 : i32, i32
  }
  func.func @transform_6(%arg0: i32) -> (i32, i32) {
    %c0_i32 = arith.constant 0 : i32
    %c0_i32_0 = arith.constant 0 : i32
    %c0_i32_1 = arith.constant 0 : i32
    return %c0_i32, %c0_i32_0 : i32, i32
  }
  func.func @transform_7(%arg0: i32) -> (i32, i32) {
    %c0_i32 = arith.constant 0 : i32
    %c0_i32_0 = arith.constant 0 : i32
    %c0_i32_1 = arith.constant 0 : i32
    return %c0_i32, %c0_i32_0 : i32, i32
  }
  func.func @transform_8(%arg0: i32) -> (i32, i32) {
    %c0_i32 = arith.constant 0 : i32
    %c0_i32_0 = arith.constant 0 : i32
    %c0_i32_1 = arith.constant 0 : i32
    return %c0_i32, %c0_i32_0 : i32, i32
  }
  func.func @transform_9(%arg0: i32) -> (i32, i32) {
    %c0_i32 = arith.constant 0 : i32
    %c0_i32_0 = arith.constant 0 : i32
    return %arg0, %c0_i32 : i32, i32
  }
}

</mosaic_0001>

<bundles_post_ra>
// kernel: tpu_custom_call.1
= control target key start
LH: loop header
LB: loop body
LE: loop exit
PB: predicated region body
PF: predicated region fallthrough
CT: control target
= control target key end

     0   :  { %15 = vsyncpa [#allocation4], 0  ;;  %s798_s0 = inlined_call_operand.hbm [shape: f32[8,16], index: 0, kind: input, shape index: {}]   ;;  %s799_s1 = inlined_call_operand.vmem [shape: f32[8,4], index: 1, kind: input, shape index: {}]   ;;  %s800_s2 = inlined_call_operand.vmem [shape: bf16[16,256], index: 2, kind: input, shape index: {}]   ;;  %s801_s3 = inlined_call_operand.hbm [shape: bf16[4,256], index: 3, kind: input, shape index: {}]   ;;  %s802_s4 = inlined_call_operand.vmem [shape: f32[1,256], index: 4, kind: input, shape index: {}]   ;;  %s803_s5 = inlined_call_operand.hbm [shape: bf16[256,256], index: 5, kind: input, shape index: {}]   ;;  %s804_s6 = inlined_call_operand.vmem [shape: f32[1,256], index: 6, kind: input, shape index: {}]   ;;  %s805_s7 = inlined_call_operand.vmem [shape: f32[1,256], index: 7, kind: input, shape index: {}]   ;;  %s806_s8 = inlined_call_operand.<no memory space> [shape: f32[1,1], index: 8, kind: input, shape index: {}]   ;;  %s807_s9 = inlined_call_operand.vmem [shape: f32[8,1], index: 9, kind: output, shape index: {}]  }
   0x1   :  { %16 = vsyncpa [#allocation6], 0 }
   0x2   :  { %21 = vsyncadd [#allocation4], 128  ;;  %s706_s30 = smov [#allocation5]   ;;  %s707_s11 = smov [#allocation3]  }
   0x3   :  { %s39_s10 = sshll.u32 %s706_s30, 4  ;;  %s22_s12 = sshll.u32 %s707_s11, 4  ;;  %s40_s10 = int_to_ptr.vmem [resolvable:$true] %s39_s10  ;;  %s23_s12 = int_to_ptr.vmem [resolvable:$true] %s22_s12 }
   0x4   :  { %s650_s13 = scalar_lea.vmem %s40_s10, 64  ;;  %p655_p1 = scmp.lt.s32.totalorder %s40_s10, %s40_s10 }
   0x5   :  { %p651_p0 = scmp.ne.s32.totalorder %s40_s10, %s650_s13  ;;  %p656_p2 = scmp.lt.s32.totalorder %s650_s13, %s650_s13 }
   0x7   :  { %p657_p3 = por %p656_p2, %p655_p1 }
   0x9   :  { %p658_p4 = pnand %p657_p3, %p651_p0 }
   0xb   :  { %661 = shalt.err (!%p658_p4)
}
   0xc   :  { %42 = dma.hbm_to_vmem [thread:$0]  %s801_s3, 64, %s40_s10, [#allocation6]  }
   0xd   :  { %s670_s16 = scalar_lea.vmem %s23_s12, 128  ;;  %s674_s17 = scalar_lea.vmem %s23_s12, 256 }
   0xe   :  { %p671_p5 = scmp.ne.s32.totalorder %s23_s12, %s670_s16  ;;  %p675_p6 = scmp.lt.s32.totalorder %s23_s12, %s23_s12 }
   0xf   :  { %p676_p7 = scmp.lt.s32.totalorder %s674_s17, %s670_s16 }
  0x11   :  { %p677_p8 = por %p676_p7, %p675_p6 }
  0x13   :  { %p678_p9 = pnand %p677_p8, %p671_p5 }
  0x15   :  { %681 = shalt.err (!%p678_p9)
}
  0x16   :  { %s708_s18 = smov 128   ;;  %s709_s19 = smov 8  }
  0x17   :  { %28 = dma.hbm_to_vmem [thread:$0]  %s798_s0, 128, %s23_s12, [#allocation4], %s708_s18, %s708_s18, %s709_s19  }
  0x18   :  { %s710_s22 = smov [#allocation7]  }
  0x19   :  { %s50_s23 = sshll.u32 %s710_s22, 4  ;;  %s51_s23 = int_to_ptr.vmem [resolvable:$true] %s50_s23 }
  0x1a   :  { %s690_s24 = scalar_lea.vmem %s51_s23, 4096  ;;  %p695_p11 = scmp.lt.s32.totalorder %s51_s23, %s51_s23 }
  0x1b   :  { %p691_p10 = scmp.ne.s32.totalorder %s51_s23, %s690_s24  ;;  %p696_p12 = scmp.lt.s32.totalorder %s690_s24, %s690_s24 }
  0x1d   :  { %p697_p13 = por %p696_p12, %p695_p11 }
  0x1f   :  { %p698_p0 = pnand %p697_p13, %p691_p10 }
  0x21   :  { %701 = shalt.err (!%p698_p0)
}
  0x22   :  { %56 = dma.hbm_to_vmem [thread:$0]  %s803_s5, 4096, %s51_s23, [#allocation6], %s708_s18, %s708_s18, %s709_s19  }
  0x23   :  { %702 = dma.done.wait [#allocation4], 256  }
  0x24   :  { %703 = vsyncadd [#allocation4], 4294967040 }
  0x25   :  { %704 = dma.done.wait [#allocation6], 4160  }
  0x26   :  { %705 = vsyncadd [#allocation6], 4294963136  ;;  %v711_v0 = vmov 0   ;;  %vm95_vm0 = vcmask 1041408   ;;  %v76_v2 = vld [vmem:[%s799_s1] sm:$0xff]  ;;  %v77_v3 = vld [vmem:[%s799_s1 + $0x8] sm:$0xff]  ;;  %v204_v45 = vlaneseq }
  0x27   :  { %134 = vmatprep.mubr.bf16.mxu1 %v711_v0  ;;  %v547_v1 = vld.sshfl [vmem:[#allocation5] sm:$0x33 pattern:$0x76325410]  ;;  %v591_v6 = vld [vmem:[%s800_s2] ss:$8 sps:$4 sm:$0xff]   ;;  %v78_v8 = vpack.c.bf16 %v77_v3, %v76_v2 }
  0x28   :  { %v90_v4 = vcombine.high %v547_v1, %v547_v1  ;;  %v97_v5 = vsel %vm95_vm0, %v547_v1, 0  ;;  %v593_v7 = vld [vmem:[%s800_s2 + $0x4] ss:$8 sps:$4 sm:$0xff]   ;;  %v594_v9 = vld [vmem:[#allocation7 + $0x74] ss:$8 sps:$4 sm:$0xff]   ;;  %vm91_vm1 = vcmask 31744  }
  0x29   :  { %v596_v10 = vld [vmem:[#allocation7 + $0x70] ss:$8 sps:$4 sm:$0xff]   ;;  %428 = vmatprep.subr.bf16.mxu0 %v594_v9  ;;  %v597_v11 = vld [vmem:[#allocation7 + $0x64] ss:$8 sps:$4 sm:$0xff]   ;;  %v599_v13 = vld [vmem:[#allocation7 + $0x60] ss:$8 sps:$4 sm:$0xff]  }
  0x2a   :  { %548 = vmatprep.subr.msk.bf16.mxu1 %vm95_vm0, %v90_v4  ;;  %v73_v12 = vld [vmem:[#allocation3] sm:$0xff]  ;;  %429 = vmatpush1.bf16.msra.mxu0 %v596_v10  ;;  %v600_v14 = vld [vmem:[#allocation7 + $0x54] ss:$8 sps:$4 sm:$0xff]   ;;  %vm155_vm2 = vcmask 130048   ;;  %v605_v19 = vld [vmem:[#allocation7 + $0x40] ss:$8 sps:$4 sm:$0xff]  }
  0x2b   :  { %117 = vmatpush1.bf16.msra.mxu1 %v97_v5  ;;  %430 = vmatprep.subr.bf16.mxu0 %v597_v11  ;;  %v74_v15 = vld [vmem:[#allocation3 + $0x8] sm:$0xff]  ;;  %v603_v18 = vld [vmem:[#allocation7 + $0x44] ss:$8 sps:$4 sm:$0xff]   ;;  %v611_v23 = vld [vmem:[#allocation7 + $0x20] ss:$8 sps:$4 sm:$0xff]   ;;  %v205_v48 = vshrl.u32 %v204_v45, 7 }
  0x2c   :  { %173 = vmatprep.subr.bf16.mxu1 %v593_v7  ;;  %v602_v16 = vld [vmem:[#allocation7 + $0x50] ss:$8 sps:$4 sm:$0xff]   ;;  %v75_v17 = vpack.c.bf16 %v74_v15, %v73_v12  ;;  %v606_v20 = vld [vmem:[#allocation7 + $0x34] ss:$8 sps:$4 sm:$0xff]   ;;  %v609_v22 = vld [vmem:[#allocation7 + $0x24] ss:$8 sps:$4 sm:$0xff]  }
  0x2d   :  { %v608_v21 = vld [vmem:[#allocation7 + $0x30] ss:$8 sps:$4 sm:$0xff]   ;;  %v612_v24 = vld [vmem:[#allocation7 + $0x14] ss:$8 sps:$4 sm:$0xff]   ;;  %v615_v26 = vld [vmem:[#allocation7 + $0x4] ss:$8 sps:$4 sm:$0xff]  }
  0x2e   :  { %549 = vmatmul.mubr.msk.bf16.vlgmr.msra.gmra.mxu1 %vm91_vm1, %v78_v8  ;;  %431 = vmatpush1.bf16.msra.mxu0 %v599_v13  ;;  %v614_v25 = vld [vmem:[#allocation7 + $0x10] ss:$8 sps:$4 sm:$0xff]   ;;  %v617_v27 = vld [vmem:[#allocation7] ss:$8 sps:$4 sm:$0xff]   ;;  %v618_v28 = vld [vmem:[#allocation7 + $0xf4] ss:$8 sps:$4 sm:$0xff]  }
  0x2f   :  { %174 = vmatpush1.bf16.msra.mxu1 %v591_v6  ;;  %191 = vmatprep.mubr.bf16.mxu1 %v711_v0  ;;  %v620_v29 = vld [vmem:[#allocation7 + $0xf0] ss:$8 sps:$4 sm:$0xff]   ;;  %v621_v30 = vld [vmem:[#allocation7 + $0xe4] ss:$8 sps:$4 sm:$0xff]   ;;  %v623_v31 = vld [vmem:[#allocation7 + $0xe0] ss:$8 sps:$4 sm:$0xff]  }
  0x30   :  { %432 = vmatprep.subr.bf16.mxu0 %v600_v14  ;;  %v624_v32 = vld [vmem:[#allocation7 + $0xd4] ss:$8 sps:$4 sm:$0xff]   ;;  %v626_v33 = vld [vmem:[#allocation7 + $0xd0] ss:$8 sps:$4 sm:$0xff]   ;;  %v627_v34 = vld [vmem:[#allocation7 + $0xc4] ss:$8 sps:$4 sm:$0xff]  }
  0x31   :  { %v629_v35 = vld [vmem:[#allocation7 + $0xc0] ss:$8 sps:$4 sm:$0xff]   ;;  %v630_v36 = vld [vmem:[#allocation7 + $0xb4] ss:$8 sps:$4 sm:$0xff]   ;;  %v632_v37 = vld [vmem:[#allocation7 + $0xb0] ss:$8 sps:$4 sm:$0xff]  }
  0x32   :  { %433 = vmatpush1.bf16.msra.mxu0 %v602_v16  ;;  %v633_v38 = vld [vmem:[#allocation7 + $0xa4] ss:$8 sps:$4 sm:$0xff]   ;;  %v635_v39 = vld [vmem:[#allocation7 + $0xa0] ss:$8 sps:$4 sm:$0xff]   ;;  %v636_v40 = vld [vmem:[#allocation7 + $0x94] ss:$8 sps:$4 sm:$0xff]  }
  0x33   :  { %434 = vmatprep.subr.bf16.mxu0 %v603_v18  ;;  %v638_v41 = vld [vmem:[#allocation7 + $0x90] ss:$8 sps:$4 sm:$0xff]   ;;  %v639_v42 = vld [vmem:[#allocation7 + $0x84] ss:$8 sps:$4 sm:$0xff]   ;;  %v641_v43 = vld [vmem:[#allocation7 + $0x80] ss:$8 sps:$4 sm:$0xff]  }
  0x34   :  { %v210_v50 = vsub.s32 1, %v205_v48  ;;  %v206_v52 = vsub.s32 0, %v205_v48  ;;  %v202_v53 = vld [vmem:[%s802_s4] sm:$0x3]  ;;  %vm501_vm3 = vcmask 7168  }
  0x35   :  { %v256_v9 = vld [vmem:[%s804_s6] sm:$0x3] }
  0x36   :  { %552 = vmatmul.mubr.msk.bf16.vlgmr.msra.gmra.mxu1 %vm155_vm2, %v75_v17  ;;  %435 = vmatpush1.bf16.msra.mxu0 %v605_v19  ;;  %v211_v56 = vrot.slane %v202_v53, %v210_v50  ;;  %v207_v58 = vrot.slane %v202_v53, %v206_v52  ;;  %v261_v10 = vrot.slane %v256_v9, %v206_v52  ;;  %v475_v13 = vld [vmem:[%s805_s7] sm:$0x3] }
  0x37   :  { %436 = vmatprep.subr.bf16.mxu0 %v606_v20  ;;  %v265_v11 = vrot.slane %v256_v9, %v210_v50  ;;  %v480_v18 = vrot.slane %v475_v13, %v206_v52  ;;  %v484_v19 = vrot.slane %v475_v13, %v210_v50 }
  0x3a   :  { %437 = vmatpush1.bf16.msra.mxu0 %v608_v21 }
  0x3b   :  { %438 = vmatprep.subr.bf16.mxu0 %v609_v22 }
  0x3e   :  { %439 = vmatpush1.bf16.msra.mxu0 %v611_v23 }
  0x3f   :  { %440 = vmatprep.subr.bf16.mxu0 %v612_v24 }
  0x42   :  { %441 = vmatpush1.bf16.msra.mxu0 %v614_v25 }
  0x43   :  { %442 = vmatprep.subr.bf16.mxu0 %v615_v26 }
  0x46   :  { %443 = vmatpush1.bf16.msra.mxu0 %v617_v27 }
  0x47   :  { %444 = vmatprep.subr.bf16.mxu0 %v618_v28 }
  0x4a   :  { %445 = vmatpush2.bf16.msra.mxu0 %v620_v29 }
  0x4b   :  { %446 = vmatprep.subr.bf16.mxu0 %v621_v30 }
  0x4e   :  { %447 = vmatpush2.bf16.msra.mxu0 %v623_v31 }
  0x4f   :  { %448 = vmatprep.subr.bf16.mxu0 %v624_v32 }
  0x52   :  { %449 = vmatpush2.bf16.msra.mxu0 %v626_v33  ;;  %v498_v33 = vstv %s806_s8 }
  0x53   :  { %450 = vmatprep.subr.bf16.mxu0 %v627_v34 }
  0x56   :  { %451 = vmatpush2.bf16.msra.mxu0 %v629_v35 }
  0x57   :  { %452 = vmatprep.subr.bf16.mxu0 %v630_v36 }
  0x5a   :  { %453 = vmatpush2.bf16.msra.mxu0 %v632_v37 }
  0x5b   :  { %454 = vmatprep.subr.bf16.mxu0 %v633_v38 }
  0x5e   :  { %455 = vmatpush2.bf16.msra.mxu0 %v635_v39 }
  0x5f   :  { %456 = vmatprep.subr.bf16.mxu0 %v636_v40 }
  0x62   :  { %457 = vmatpush2.bf16.msra.mxu0 %v638_v41 }
  0x63   :  { %458 = vmatprep.subr.bf16.mxu0 %v639_v42 }
  0x66   :  { %459 = vmatpush2.bf16.msra.mxu0 %v641_v43 }
  0xee   :  { %v136_v44 = vpop.f32.mrf.mxu1 }
  0xf0   :  { %v138_v46 = vpop.f32.mrf.mxu1 }
  0xf2   :  { %v140_v47 = vpop.f32.mrf.mxu1 }
  0xf4   :  { %v142_v49 = vpop.f32.mrf.mxu1 }
  0xf6   :  { %v193_v51 = vpop.f32.mrf.mxu1 }
  0xf7   :  { %v194_v57 = vadd.f32 %v193_v51, %v136_v44 }
  0xf8   :  { %v195_v54 = vpop.f32.mrf.mxu1 }
  0xf9   :  { %v196_v55 = vadd.f32 %v195_v54, %v138_v46  ;;  %v214_v1 = vadd.f32 %v207_v58, %v194_v57 }
  0xfa   :  { %v197_v59 = vpop.f32.mrf.mxu1 }
  0xfb   :  { %v198_v60 = vadd.f32 %v197_v59, %v140_v47  ;;  %v215_v0 = vadd.f32 %v211_v56, %v196_v55  ;;  %v218_v6 = vmax.f32 %v214_v1, 0.0 }
  0xfc   :  { %v199_v61 = vpop.f32.mrf.mxu1 }
  0xfd   :  { %v216_v62 = vadd.f32 %v207_v58, %v198_v60  ;;  %v200_v63 = vadd.f32 %v199_v61, %v142_v49  ;;  %v219_v4 = vmax.f32 %v215_v0, 0.0 }
  0xff   :  { %v217_v2 = vadd.f32 %v211_v56, %v200_v63  ;;  %v220_v3 = vmax.f32 %v216_v62, 0.0 }
 0x101   :  { %v221_v5 = vmax.f32 %v217_v2, 0.0  ;;  %v222_v8 = vpack.c.bf16 %v220_v3, %v218_v6 }
 0x103   :  { %v223_v7 = vpack.c.bf16 %v221_v5, %v219_v4 }
 0x105   :  { %460 = vmatprep.mubr.bf16.mxu0 %v223_v7 }
 0x106   :  { %461 = vmatmul.mubr.bf16.vlgmr.msra.gmra.mxu0 %v222_v8 }
 0x1c6   :  { %v462_v12 = vpop.f32.mrf.mxu0 }
 0x1c7   :  { %v463_v14 = vadd.f32 %v462_v12, %v261_v10 }
 0x1c8   :  { %v464_v15 = vpop.f32.mrf.mxu0 }
 0x1c9   :  { %v471_v16 = vmax.f32 %v463_v14, 0.0  ;;  %v465_v17 = vadd.f32 %v464_v15, %v265_v11 }
 0x1ca   :  { %v466_v20 = vpop.f32.mrf.mxu0 }
 0x1cb   :  { %v472_v21 = vmax.f32 %v465_v17, 0.0  ;;  %v467_v22 = vadd.f32 %v466_v20, %v261_v10  ;;  %v487_v26 = vmul.f32 %v480_v18, %v471_v16 }
 0x1cc   :  { %v468_v23 = vpop.f32.mrf.mxu0 }
 0x1cd   :  { %v473_v24 = vmax.f32 %v467_v22, 0.0  ;;  %v469_v25 = vadd.f32 %v468_v23, %v265_v11  ;;  %v488_v27 = vmul.f32 %v484_v19, %v472_v21 }
 0x1cf   :  { %v474_v28 = vmax.f32 %v469_v25, 0.0  ;;  %v491_v29 = vadd.f32 %v488_v27, %v487_v26  ;;  %v489_v30 = vmul.f32 %v480_v18, %v473_v24 }
 0x1d1   :  { %v490_v31 = vmul.f32 %v484_v19, %v474_v28  ;;  %492 = vadd.xlane.f32.xlu0 %v491_v29 }
 0x1d3   :  { %v494_v32 = vadd.f32 %v490_v31, %v489_v30 }
 0x1d5   :  { %495 = vadd.xlane.f32.xlu0 %v494_v32 }
 0x25a   :  { %v493_v34 = vpop.xlane.xlu0 %492 }
 0x25b   :  { %v499_v35 = vadd.f32 %v498_v33, %v493_v34 }
 0x25d   :  { %502 = vst.msk [vmem:[#allocation8] sm:$0xff] %vm501_vm3, %v499_v35 }
 0x25e   :  { %v496_v36 = vpop.xlane.xlu0 %495 }
 0x264   :  { %v534_v37 = vld [vmem:[#allocation8] sm:$0xff] }
 0x265   :  { %535 = vst [vmem:[%s807_s9] sm:$0xff] %v534_v37 }
 0x266   :  { %541 = vsyncpa [#allocation4], 1 }
 0x267   :  { %542 = vsyncpa [#allocation6], 1 }

</bundles_post_ra>
